<compile_context>
chip_gen: v5e
topology: v5e:2x2
jax: 0.10.0
libtpu: 0.0.40
codegen_flags: <defaults>
</compile_context>

<pallas_src>
import functools

import jax
import jax.numpy as jnp
from jax.experimental import pallas as pl
from jax.experimental.pallas import tpu as pltpu


def mha_pool_kernel(hidden_ref, bias_ref, w_score_t_ref, b_score_t_ref,
                    wvT_ref, bv_ref, wfT_ref, bf_ref, mt_ref, sel_ref,
                    out_ref, *, block_b, seq):
    """One grid step processes `block_b` batch elements (rows = block_b * seq)."""
    f32 = jnp.float32
    bf16 = jnp.bfloat16

    h = hidden_ref[...].astype(bf16)            # (rows, H)  cast once after load
    bias = bias_ref[...]                        # (block_b, seq) f32 additive key-pad bias
    wst = w_score_t_ref[...]                    # (nh, H) bf16, scaled query folded in
    bst = b_score_t_ref[...]                    # (nh, 1) f32

    # Per batch: scores (nh, S) via one NT matmul, lane-wise softmax, then pool the
    # hidden rows per head (Wv is deferred to the nh pooled rows below).
    pooled_rows = []
    for b in range(block_b):                    # statically unrolled, block_b <= 16
        hb = h[b * seq:(b + 1) * seq, :]        # (S, H) bf16, sublane aligned (S % 8 == 0)
        sc = jax.lax.dot_general(wst, hb, (((1,), (1,)), ((), ())),
                                 preferred_element_type=f32)            # (nh, S)
        sc = sc + bst + bias[b:b + 1, :]        # per-head bias + key-padding bias (f32)
        smax = jnp.max(sc, axis=-1, keepdims=True)                      # (nh, 1)
        p = jnp.exp(sc - smax)                                          # (nh, S)
        denom = jnp.sum(p, axis=-1, keepdims=True)                      # (nh, 1)
        p_norm = (p * pl.reciprocal(denom, approx=True)).astype(bf16)   # 1/denom folded into p
        pooled_rows.append(jnp.dot(p_norm, hb, preferred_element_type=f32))   # (nh, H)
    pooled = pooled_rows[0] if block_b == 1 else jnp.concatenate(pooled_rows, axis=0)

    # Deferred V projection: only block_b*nh rows instead of block_b*S.
    temp = jnp.dot(pooled.astype(bf16), wvT_ref[...],
                   preferred_element_type=f32)                           # (block_b*nh, H)
    # Keep head n's own columns of row (b, n) and sum the heads with one small matmul.
    ctx = jnp.dot(sel_ref[...], temp * mt_ref[...],
                  preferred_element_type=f32) + bv_ref[...]              # (block_b, H)

    # Fused out_proj + final Linear, then tanh; one dense (block_b, H) store.
    pooled_out = jnp.dot(ctx.astype(bf16), wfT_ref[...],
                         preferred_element_type=f32) + bf_ref[...]
    out_ref[...] = jnp.tanh(pooled_out).astype(out_ref.dtype)


def multi_head_attention_pooling(hidden_states, attention_mask, params, num_heads,
                                 block_b=None):
    B, S, H = hidden_states.shape
    assert H % num_heads == 0
    hd = H // num_heads
    scale = 1.0 / (hd ** 0.5)
    f32, bf16 = jnp.float32, jnp.bfloat16

    # Pad the key axis to a multiple of 8 so per-batch slices are sublane-tile aligned.
    S_pad = ((S + 7) // 8) * 8
    if S_pad != S:
        hidden_states = jnp.pad(hidden_states, ((0, 0), (0, S_pad - S), (0, 0)))
        attention_mask = jnp.pad(attention_mask, ((0, 0), (0, S_pad - S)))   # 0 => padded key

    # block_b: a divisor of B targeting <= ~1024 rows per step (amortizes per-step
    # overhead toward the HBM roofline), capped so the in-kernel unroll stays small,
    # and keeping >= 2 grid steps whenever possible (v7x has 2 TensorCores).
    if block_b is None:
        block_b = 1
        for d in range(1, B + 1):
            if B % d == 0 and d <= 16 and d * S_pad <= 1024 and (B // d >= 2 or B == 1):
                block_b = d
    assert B % block_b == 0
    grid_b = B // block_b
    rows = block_b * S_pad
    # TODO(synk): tile the sequence axis too for very long S (rows*H*4 must fit VMEM).

    # ---- host-side weight preparation (O(H^2), once, outside the kernel) ----
    # Pre-scaled learned query folded into the key projection.
    q = (params["q_vec"].reshape(1, H).astype(f32) @ params["wq"].T.astype(f32)
         + params["bq"].reshape(1, H).astype(f32)) * scale                       # (1, H)
    head_ids = jnp.arange(H) // hd
    M = (head_ids[:, None] == jnp.arange(num_heads)[None, :]).astype(f32)        # (H, nh)
    w_score_t = ((params["wk"].T.astype(f32) * q) @ M).T.astype(bf16)            # (nh, H)
    b_score_t = ((params["bk"].reshape(1, H).astype(f32) * q) @ M).reshape(num_heads, 1)

    # V projection (applied post-pooling) and the exact fusion of out_proj + Linear.
    wvT = params["wv"].T.astype(bf16)                                             # (H, H)
    bv = params["bv"].reshape(1, H).astype(f32)
    wlT = params["wl"].T.astype(f32)
    wfT = (params["wo"].T.astype(f32) @ wlT).astype(bf16)                         # (H, H)
    bfu = params["bo"].reshape(1, H).astype(f32) @ wlT + params["bl"].reshape(1, H).astype(f32)

    # Head-selection constants for the epilogue (row (b, n) keeps head n's columns).
    mt_tiled = jnp.tile(M.T, (block_b, 1))                                        # (block_b*nh, H)
    sel = (jnp.arange(block_b)[:, None]
           == (jnp.arange(block_b * num_heads)[None, :] // num_heads)).astype(f32)

    # Additive key-padding bias, lane-dense (block_b, S_pad) blocks (stays f32).
    bias = ((attention_mask.astype(f32) - 1.0) * 1e30).reshape(grid_b, block_b, S_pad)

    # hidden as a flat (B*S_pad, H) row slab in its original dtype (no bf16 round-trip).
    hidden2d = hidden_states.reshape(B * S_pad, H)

    # VMEM budget: double-buffered streamed blocks + single-buffered constants +
    # f32 temporaries, clamped to a safe fraction of this chip's VMEM.
    op_bytes = (2 * rows * H * 4 + 2 * rows * 4
                + 2 * H * H * 2 + num_heads * H * 2
                + block_b * num_heads * (H + block_b) * 4
                + 6 * H * 4
                + 2 * block_b * H * 4)
    tmp_bytes = 3 * rows * H * 4
    try:
        vmem_cap = int(pltpu.get_tpu_info().vmem_capacity_bytes)
    except Exception:
        vmem_cap = 64 * 1024 * 1024
    vmem_limit = int(min(max(op_bytes + tmp_bytes + (8 << 20), 32 << 20),
                         (vmem_cap * 3) // 4, 100 << 20))
    # TODO(synk): for H >= ~3072 the resident HxH weights exceed v7x VMEM even
    # single-buffered; add a K-dim grid axis ("arbitrary") to tile wvT / wfT.

    args = (hidden2d, bias, w_score_t, b_score_t, wvT, bv, wfT, bfu, mt_tiled, sel)

    def run(single_buffer_consts):
        def const_spec(shape):
            # Constant operand: same block every step; single-buffer it so resident
            # HxH weights only cost 1x VMEM (matters most on v7x's 64 MiB).
            kwargs = {}
            if single_buffer_consts:
                kwargs["pipeline_mode"] = pl.Buffered(1)
            return pl.BlockSpec(shape, lambda i: (0,) * len(shape), **kwargs)

        in_specs = [
            pl.BlockSpec((rows, H), lambda i: (i, 0)),                   # hidden rows
            pl.BlockSpec((None, block_b, S_pad), lambda i: (i, 0, 0)),   # key-padding bias
            const_spec(w_score_t.shape), const_spec(b_score_t.shape),
            const_spec(wvT.shape), const_spec(bv.shape),
            const_spec(wfT.shape), const_spec(bfu.shape),
            const_spec(mt_tiled.shape), const_spec(sel.shape),
        ]
        return pl.pallas_call(
            functools.partial(mha_pool_kernel, block_b=block_b, seq=S_pad),
            out_shape=jax.ShapeDtypeStruct((grid_b, block_b, H), jnp.float32),
            grid=(grid_b,),
            in_specs=in_specs,
            out_specs=pl.BlockSpec((None, block_b, H), lambda i: (i, 0, 0)),
            compiler_params=pltpu.CompilerParams(
                dimension_semantics=("parallel",),
                vmem_limit_bytes=vmem_limit),
        )(*args)

    use_sb = hasattr(pl, "Buffered")
    try:
        out3 = run(use_sb)
    except Exception:
        if not use_sb:
            raise
        out3 = run(False)   # fall back to default double-buffering if Buffered(1) rejected
    return out3.reshape(B, H)


def reference(hidden, mask, params, num_heads):
    # Pure-JAX f32 reference replicating PyTorch nn.MultiheadAttention pooling semantics.
    B, S, H = hidden.shape
    hd = H // num_heads
    q = params["q_vec"].reshape(1, H) @ params["wq"].T + params["bq"]     # (1, H)
    k = hidden @ params["wk"].T + params["bk"]                            # (B, S, H)
    v = hidden @ params["wv"].T + params["bv"]                            # (B, S, H)
    qh = q.reshape(num_heads, hd)
    kh = k.reshape(B, S, num_heads, hd)
    vh = v.reshape(B, S, num_heads, hd)
    scores = jnp.einsum('nd,bsnd->bns', qh, kh) / jnp.sqrt(float(hd))
    scores = jnp.where(mask[:, None, :].astype(bool), scores, -1e30)
    attn = jax.nn.softmax(scores, axis=-1)
    ctx = jnp.einsum('bns,bsnd->bnd', attn, vh).reshape(B, H)
    attn_out = ctx @ params["wo"].T + params["bo"]
    return jnp.tanh(attn_out @ params["wl"].T + params["bl"])


if __name__ == "__main__":
    B, S, H, NH = 2, 8, 32, 8
    key = jax.random.PRNGKey(0)
    keys = jax.random.split(key, 16)

    def randn(k, shape, scl=0.1):
        return jax.random.normal(k, shape, dtype=jnp.float32) * scl

    params = {
        "q_vec": randn(keys[0], (1, H), 1.0),   # nn.Parameter(torch.randn(1, 1, H)), seq dim folded
        "wq": randn(keys[1], (H, H)), "bq": randn(keys[2], (H,)),
        "wk": randn(keys[3], (H, H)), "bk": randn(keys[4], (H,)),
        "wv": randn(keys[5], (H, H)), "bv": randn(keys[6], (H,)),
        "wo": randn(keys[7], (H, H)), "bo": randn(keys[8], (H,)),
        "wl": randn(keys[9], (H, H)), "bl": randn(keys[10], (H,)),
    }

    hidden = jax.random.normal(keys[11], (B, S, H), dtype=jnp.float32)
    # attention_mask: 1 = attend, 0 = padded (pad the last 2 tokens of batch 1)
    attention_mask = jnp.ones((B, S), dtype=jnp.int32).at[1, S - 2:].set(0)

    out = multi_head_attention_pooling(hidden, attention_mask, params, NH)
    out = jax.block_until_ready(out)

    ref = reference(hidden, attention_mask, params, NH)
    assert out.shape == (B, H)
    max_err = float(jnp.max(jnp.abs(out - ref)))
    # bf16-streamed weights/activations with f32 accumulation: bf16-rounding tolerance
    assert jnp.allclose(out, ref, atol=2e-2, rtol=2e-2), max_err
    print("KERNEL_OK")
</pallas_src>

<mosaic_0001>
module attributes {stable_mosaic.version = 11 : i64} {
  func.func @mha_pool_kernel(%arg0: i32, %arg1: memref<8x32xf32, #tpu.memory_space<vmem>>, %arg2: memref<1x1x8xf32, #tpu.memory_space<vmem>>, %arg3: memref<8x32xbf16, #tpu.memory_space<vmem>>, %arg4: memref<8x1xf32, #tpu.memory_space<vmem>>, %arg5: memref<32x32xbf16, #tpu.memory_space<vmem>>, %arg6: memref<1x32xf32, #tpu.memory_space<vmem>>, %arg7: memref<32x32xbf16, #tpu.memory_space<vmem>>, %arg8: memref<1x32xf32, #tpu.memory_space<vmem>>, %arg9: memref<8x32xf32, #tpu.memory_space<vmem>>, %arg10: memref<1x8xf32, #tpu.memory_space<vmem>>, %arg11: memref<1x1x32xf32, #tpu.memory_space<vmem>>) attributes {dimension_semantics = [#tpu.dimension_semantics<parallel>], iteration_bounds = array<i64: 2>, scalar_prefetch = 0 : i64, scratch_operands = 0 : i64, tpu.core_type = #tpu.core_type<tc>, window_params = [{transform_indices = @transform_0, window_bounds = array<i64: 8, 32>}, {transform_indices = @transform_1, window_bounds = array<i64: 1, 1, 8>}, {pipeline_mode = #tpu.pipeline_mode<synchronous>, transform_indices = @transform_2, window_bounds = array<i64: 8, 32>}, {pipeline_mode = #tpu.pipeline_mode<synchronous>, transform_indices = @transform_3, window_bounds = array<i64: 8, 1>}, {pipeline_mode = #tpu.pipeline_mode<synchronous>, transform_indices = @transform_4, window_bounds = array<i64: 32, 32>}, {pipeline_mode = #tpu.pipeline_mode<synchronous>, transform_indices = @transform_5, window_bounds = array<i64: 1, 32>}, {pipeline_mode = #tpu.pipeline_mode<synchronous>, transform_indices = @transform_6, window_bounds = array<i64: 32, 32>}, {pipeline_mode = #tpu.pipeline_mode<synchronous>, transform_indices = @transform_7, window_bounds = array<i64: 1, 32>}, {pipeline_mode = #tpu.pipeline_mode<synchronous>, transform_indices = @transform_8, window_bounds = array<i64: 8, 32>}, {pipeline_mode = #tpu.pipeline_mode<synchronous>, transform_indices = @transform_9, window_bounds = array<i64: 1, 8>}, {transform_indices = @transform_10, window_bounds = array<i64: 1, 1, 32>}]} {
    %c0 = arith.constant 0 : index
    %c0_0 = arith.constant 0 : index
    %0 = vector.load %arg1[%c0, %c0_0] : memref<8x32xf32, #tpu.memory_space<vmem>>, vector<8x32xf32>
    %1 = arith.truncf %0 : vector<8x32xf32> to vector<8x32xbf16>
    %c0_1 = arith.constant 0 : index
    %c0_2 = arith.constant 0 : index
    %c0_3 = arith.constant 0 : index
    %2 = vector.load %arg2[%c0_1, %c0_2, %c0_3] : memref<1x1x8xf32, #tpu.memory_space<vmem>>, vector<1x1x8xf32>
    %3 = vector.shape_cast %2 : vector<1x1x8xf32> to vector<1x8xf32>
    %c0_4 = arith.constant 0 : index
    %c0_5 = arith.constant 0 : index
    %4 = vector.load %arg3[%c0_4, %c0_5] : memref<8x32xbf16, #tpu.memory_space<vmem>>, vector<8x32xbf16>
    %c0_6 = arith.constant 0 : index
    %c0_7 = arith.constant 0 : index
    %5 = vector.load %arg4[%c0_6, %c0_7] : memref<8x1xf32, #tpu.memory_space<vmem>>, vector<8x1xf32>
    %cst = arith.constant dense<0.000000e+00> : vector<8x8xf32>
    %6 = tpu.matmul %4, %1, %cst {dimension_numbers = #tpu.dot_dimension_numbers<[1], [1], [0], [0], [0, 0, 1, 0], [], []>} : vector<8x32xbf16>, vector<8x32xbf16>, vector<8x8xf32> -> vector<8x8xf32>
    %7 = vector.broadcast %5 : vector<8x1xf32> to vector<8x8xf32>
    %8 = arith.addf %6, %7 : vector<8x8xf32>
    %9 = vector.broadcast %3 : vector<1x8xf32> to vector<8x8xf32>
    %10 = arith.addf %8, %9 : vector<8x8xf32>
    %cst_8 = arith.constant dense<0xFF800000> : vector<8xf32>
    %11 = vector.multi_reduction <maximumf>, %10, %cst_8 [1] : vector<8x8xf32> to vector<8xf32>
    %12 = vector.shape_cast %11 : vector<8xf32> to vector<8x1xf32>
    %13 = vector.broadcast %12 : vector<8x1xf32> to vector<8x8xf32>
    %14 = arith.subf %10, %13 : vector<8x8xf32>
    %15 = math.exp %14 : vector<8x8xf32>
    %cst_9 = arith.constant dense<0.000000e+00> : vector<8xf32>
    %16 = vector.multi_reduction <add>, %15, %cst_9 [1] : vector<8x8xf32> to vector<8xf32>
    %17 = vector.shape_cast %16 : vector<8xf32> to vector<8x1xf32>
    %18 = tpu.reciprocal %17 {approx = true} : vector<8x1xf32> -> vector<8x1xf32>
    %19 = vector.broadcast %18 : vector<8x1xf32> to vector<8x8xf32>
    %20 = arith.mulf %15, %19 : vector<8x8xf32>
    %21 = arith.truncf %20 : vector<8x8xf32> to vector<8x8xbf16>
    %cst_10 = arith.constant dense<0.000000e+00> : vector<8x32xf32>
    %22 = tpu.matmul %21, %1, %cst_10 {dimension_numbers = #tpu.dot_dimension_numbers<[1], [0], [0], [1], [0, 0, 1, 1], [], []>} : vector<8x8xbf16>, vector<8x32xbf16>, vector<8x32xf32> -> vector<8x32xf32>
    %23 = arith.truncf %22 : vector<8x32xf32> to vector<8x32xbf16>
    %c0_11 = arith.constant 0 : index
    %c0_12 = arith.constant 0 : index
    %24 = vector.load %arg5[%c0_11, %c0_12] : memref<32x32xbf16, #tpu.memory_space<vmem>>, vector<32x32xbf16>
    %cst_13 = arith.constant dense<0.000000e+00> : vector<8x32xf32>
    %25 = tpu.matmul %23, %24, %cst_13 {dimension_numbers = #tpu.dot_dimension_numbers<[1], [0], [0], [1], [0, 0, 1, 1], [], []>} : vector<8x32xbf16>, vector<32x32xbf16>, vector<8x32xf32> -> vector<8x32xf32>
    %c0_14 = arith.constant 0 : index
    %c0_15 = arith.constant 0 : index
    %26 = vector.load %arg10[%c0_14, %c0_15] : memref<1x8xf32, #tpu.memory_space<vmem>>, vector<1x8xf32>
    %c0_16 = arith.constant 0 : index
    %c0_17 = arith.constant 0 : index
    %27 = vector.load %arg9[%c0_16, %c0_17] : memref<8x32xf32, #tpu.memory_space<vmem>>, vector<8x32xf32>
    %28 = arith.mulf %25, %27 : vector<8x32xf32>
    %cst_18 = arith.constant dense<0.000000e+00> : vector<1x32xf32>
    %29 = tpu.matmul %26, %28, %cst_18 {dimension_numbers = #tpu.dot_dimension_numbers<[1], [0], [0], [1], [0, 0, 1, 1], [], []>} : vector<1x8xf32>, vector<8x32xf32>, vector<1x32xf32> -> vector<1x32xf32>
    %c0_19 = arith.constant 0 : index
    %c0_20 = arith.constant 0 : index
    %30 = vector.load %arg6[%c0_19, %c0_20] : memref<1x32xf32, #tpu.memory_space<vmem>>, vector<1x32xf32>
    %31 = arith.addf %29, %30 : vector<1x32xf32>
    %32 = arith.truncf %31 : vector<1x32xf32> to vector<1x32xbf16>
    %c0_21 = arith.constant 0 : index
    %c0_22 = arith.constant 0 : index
    %33 = vector.load %arg7[%c0_21, %c0_22] : memref<32x32xbf16, #tpu.memory_space<vmem>>, vector<32x32xbf16>
    %cst_23 = arith.constant dense<0.000000e+00> : vector<1x32xf32>
    %34 = tpu.matmul %32, %33, %cst_23 {dimension_numbers = #tpu.dot_dimension_numbers<[1], [0], [0], [1], [0, 0, 1, 1], [], []>} : vector<1x32xbf16>, vector<32x32xbf16>, vector<1x32xf32> -> vector<1x32xf32>
    %c0_24 = arith.constant 0 : index
    %c0_25 = arith.constant 0 : index
    %35 = vector.load %arg8[%c0_24, %c0_25] : memref<1x32xf32, #tpu.memory_space<vmem>>, vector<1x32xf32>
    %36 = arith.addf %34, %35 : vector<1x32xf32>
    %37 = math.tanh %36 : vector<1x32xf32>
    %c0_26 = arith.constant 0 : index
    %c0_27 = arith.constant 0 : index
    %c0_28 = arith.constant 0 : index
    %38 = vector.load %arg11[%c0_26, %c0_27, %c0_28] : memref<1x1x32xf32, #tpu.memory_space<vmem>>, vector<1x1x32xf32>
    %39 = vector.shape_cast %38 : vector<1x1x32xf32> to vector<1x32xf32>
    %40 = vector.shape_cast %37 : vector<1x32xf32> to vector<1x1x32xf32>
    tpu.vector_store %arg11[%c0_26, %c0_27, %c0_28], %40 {strides = array<i32>} : memref<1x1x32xf32, #tpu.memory_space<vmem>>, vector<1x1x32xf32>,
    return
  }
  func.func @transform_0(%arg0: i32) -> (i32, i32) {
    %c0_i32 = arith.constant 0 : i32
    %c0_i32_0 = arith.constant 0 : i32
    return %arg0, %c0_i32 : i32, i32
  }
  func.func @transform_1(%arg0: i32) -> (i32, i32, i32) {
    %c0_i32 = arith.constant 0 : i32
    %c0_i32_0 = arith.constant 0 : i32
    %c0_i32_1 = arith.constant 0 : i32
    return %arg0, %c0_i32, %c0_i32_0 : i32, i32, i32
  }
  func.func @transform_2(%arg0: i32) -> (i32, i32) {
    %c0_i32 = arith.constant 0 : i32
    %c0_i32_0 = arith.constant 0 : i32
    %c0_i32_1 = arith.constant 0 : i32
    return %c0_i32, %c0_i32_0 : i32, i32
  }
  func.func @transform_3(%arg0: i32) -> (i32, i32) {
    %c0_i32 = arith.constant 0 : i32
    %c0_i32_0 = arith.constant 0 : i32
    %c0_i32_1 = arith.constant 0 : i32
    return %c0_i32, %c0_i32_0 : i32, i32
  }
  func.func @transform_4(%arg0: i32) -> (i32, i32) {
    %c0_i32 = arith.constant 0 : i32
    %c0_i32_0 = arith.constant 0 : i32
    %c0_i32_1 = arith.constant 0 : i32
    return %c0_i32, %c0_i32_0 : i32, i32
  }
  func.func @transform_5(%arg0: i32) -> (i32, i32) {
    %c0_i32 = arith.constant 0 : i32
    %c0_i32_0 = arith.constant 0 : i32
    %c0_i32_1 = arith.constant 0 : i32
    return %c0_i32, %c0_i32_0 : i32, i32
  }
  func.func @transform_6(%arg0: i32) -> (i32, i32) {
    %c0_i32 = arith.constant 0 : i32
    %c0_i32_0 = arith.constant 0 : i32
    %c0_i32_1 = arith.constant 0 : i32
    return %c0_i32, %c0_i32_0 : i32, i32
  }
  func.func @transform_7(%arg0: i32) -> (i32, i32) {
    %c0_i32 = arith.constant 0 : i32
    %c0_i32_0 = arith.constant 0 : i32
    %c0_i32_1 = arith.constant 0 : i32
    return %c0_i32, %c0_i32_0 : i32, i32
  }
  func.func @transform_8(%arg0: i32) -> (i32, i32) {
    %c0_i32 = arith.constant 0 : i32
    %c0_i32_0 = arith.constant 0 : i32
    %c0_i32_1 = arith.constant 0 : i32
    return %c0_i32, %c0_i32_0 : i32, i32
  }
  func.func @transform_9(%arg0: i32) -> (i32, i32) {
    %c0_i32 = arith.constant 0 : i32
    %c0_i32_0 = arith.constant 0 : i32
    %c0_i32_1 = arith.constant 0 : i32
    return %c0_i32, %c0_i32_0 : i32, i32
  }
  func.func @transform_10(%arg0: i32) -> (i32, i32, i32) {
    %c0_i32 = arith.constant 0 : i32
    %c0_i32_0 = arith.constant 0 : i32
    %c0_i32_1 = arith.constant 0 : i32
    return %arg0, %c0_i32, %c0_i32_0 : i32, i32, i32
  }
}

module attributes {stable_mosaic.version = 11 : i64} {
  func.func @mha_pool_kernel(%arg0: i32, %arg1: memref<8x32xf32, #tpu.memory_space<vmem>>, %arg2: memref<1x1x8xf32, #tpu.memory_space<vmem>>, %arg3: memref<8x32xbf16, #tpu.memory_space<vmem>>, %arg4: memref<8x1xf32, #tpu.memory_space<vmem>>, %arg5: memref<32x32xbf16, #tpu.memory_space<vmem>>, %arg6: memref<1x32xf32, #tpu.memory_space<vmem>>, %arg7: memref<32x32xbf16, #tpu.memory_space<vmem>>, %arg8: memref<1x32xf32, #tpu.memory_space<vmem>>, %arg9: memref<8x32xf32, #tpu.memory_space<vmem>>, %arg10: memref<1x8xf32, #tpu.memory_space<vmem>>, %arg11: memref<1x1x32xf32, #tpu.memory_space<vmem>>) attributes {dimension_semantics = [#tpu.dimension_semantics<parallel>], iteration_bounds = array<i64: 2>, scalar_prefetch = 0 : i64, scratch_operands = 0 : i64, tpu.core_type = #tpu.core_type<tc>, window_params = [{transform_indices = @transform_0, window_bounds = array<i64: 8, 32>}, {transform_indices = @transform_1, window_bounds = array<i64: 1, 1, 8>}, {pipeline_mode = #tpu.pipeline_mode<synchronous>, transform_indices = @transform_2, window_bounds = array<i64: 8, 32>}, {pipeline_mode = #tpu.pipeline_mode<synchronous>, transform_indices = @transform_3, window_bounds = array<i64: 8, 1>}, {pipeline_mode = #tpu.pipeline_mode<synchronous>, transform_indices = @transform_4, window_bounds = array<i64: 32, 32>}, {pipeline_mode = #tpu.pipeline_mode<synchronous>, transform_indices = @transform_5, window_bounds = array<i64: 1, 32>}, {pipeline_mode = #tpu.pipeline_mode<synchronous>, transform_indices = @transform_6, window_bounds = array<i64: 32, 32>}, {pipeline_mode = #tpu.pipeline_mode<synchronous>, transform_indices = @transform_7, window_bounds = array<i64: 1, 32>}, {pipeline_mode = #tpu.pipeline_mode<synchronous>, transform_indices = @transform_8, window_bounds = array<i64: 8, 32>}, {pipeline_mode = #tpu.pipeline_mode<synchronous>, transform_indices = @transform_9, window_bounds = array<i64: 1, 8>}, {transform_indices = @transform_10, window_bounds = array<i64: 1, 1, 32>}]} {
    %c0 = arith.constant 0 : index
    %c0_0 = arith.constant 0 : index
    %0 = vector.load %arg1[%c0, %c0_0] : memref<8x32xf32, #tpu.memory_space<vmem>>, vector<8x32xf32>
    %1 = arith.truncf %0 : vector<8x32xf32> to vector<8x32xbf16>
    %c0_1 = arith.constant 0 : index
    %c0_2 = arith.constant 0 : index
    %c0_3 = arith.constant 0 : index
    %2 = vector.load %arg2[%c0_1, %c0_2, %c0_3] : memref<1x1x8xf32, #tpu.memory_space<vmem>>, vector<1x1x8xf32>
    %3 = vector.shape_cast %2 : vector<1x1x8xf32> to vector<1x8xf32>
    %c0_4 = arith.constant 0 : index
    %c0_5 = arith.constant 0 : index
    %4 = vector.load %arg3[%c0_4, %c0_5] : memref<8x32xbf16, #tpu.memory_space<vmem>>, vector<8x32xbf16>
    %c0_6 = arith.constant 0 : index
    %c0_7 = arith.constant 0 : index
    %5 = vector.load %arg4[%c0_6, %c0_7] : memref<8x1xf32, #tpu.memory_space<vmem>>, vector<8x1xf32>
    %cst = arith.constant dense<0.000000e+00> : vector<8x8xf32>
    %6 = tpu.matmul %4, %1, %cst {dimension_numbers = #tpu.dot_dimension_numbers<[1], [1], [0], [0], [0, 0, 1, 0], [], []>} : vector<8x32xbf16>, vector<8x32xbf16>, vector<8x8xf32> -> vector<8x8xf32>
    %7 = vector.broadcast %5 : vector<8x1xf32> to vector<8x8xf32>
    %8 = arith.addf %6, %7 : vector<8x8xf32>
    %9 = vector.broadcast %3 : vector<1x8xf32> to vector<8x8xf32>
    %10 = arith.addf %8, %9 : vector<8x8xf32>
    %cst_8 = arith.constant dense<0xFF800000> : vector<8xf32>
    %11 = vector.multi_reduction <maximumf>, %10, %cst_8 [1] : vector<8x8xf32> to vector<8xf32>
    %12 = vector.shape_cast %11 : vector<8xf32> to vector<8x1xf32>
    %13 = vector.broadcast %12 : vector<8x1xf32> to vector<8x8xf32>
    %14 = arith.subf %10, %13 : vector<8x8xf32>
    %15 = math.exp %14 : vector<8x8xf32>
    %cst_9 = arith.constant dense<0.000000e+00> : vector<8xf32>
    %16 = vector.multi_reduction <add>, %15, %cst_9 [1] : vector<8x8xf32> to vector<8xf32>
    %17 = vector.shape_cast %16 : vector<8xf32> to vector<8x1xf32>
    %18 = tpu.reciprocal %17 {approx = true} : vector<8x1xf32> -> vector<8x1xf32>
    %19 = vector.broadcast %18 : vector<8x1xf32> to vector<8x8xf32>
    %20 = arith.mulf %15, %19 : vector<8x8xf32>
    %21 = arith.truncf %20 : vector<8x8xf32> to vector<8x8xbf16>
    %cst_10 = arith.constant dense<0.000000e+00> : vector<8x32xf32>
    %22 = tpu.matmul %21, %1, %cst_10 {dimension_numbers = #tpu.dot_dimension_numbers<[1], [0], [0], [1], [0, 0, 1, 1], [], []>} : vector<8x8xbf16>, vector<8x32xbf16>, vector<8x32xf32> -> vector<8x32xf32>
    %23 = arith.truncf %22 : vector<8x32xf32> to vector<8x32xbf16>
    %c0_11 = arith.constant 0 : index
    %c0_12 = arith.constant 0 : index
    %24 = vector.load %arg5[%c0_11, %c0_12] : memref<32x32xbf16, #tpu.memory_space<vmem>>, vector<32x32xbf16>
    %cst_13 = arith.constant dense<0.000000e+00> : vector<8x32xf32>
    %25 = tpu.matmul %23, %24, %cst_13 {dimension_numbers = #tpu.dot_dimension_numbers<[1], [0], [0], [1], [0, 0, 1, 1], [], []>} : vector<8x32xbf16>, vector<32x32xbf16>, vector<8x32xf32> -> vector<8x32xf32>
    %c0_14 = arith.constant 0 : index
    %c0_15 = arith.constant 0 : index
    %26 = vector.load %arg10[%c0_14, %c0_15] : memref<1x8xf32, #tpu.memory_space<vmem>>, vector<1x8xf32>
    %c0_16 = arith.constant 0 : index
    %c0_17 = arith.constant 0 : index
    %27 = vector.load %arg9[%c0_16, %c0_17] : memref<8x32xf32, #tpu.memory_space<vmem>>, vector<8x32xf32>
    %28 = arith.mulf %25, %27 : vector<8x32xf32>
    %cst_18 = arith.constant dense<0.000000e+00> : vector<1x32xf32>
    %29 = tpu.matmul %26, %28, %cst_18 {dimension_numbers = #tpu.dot_dimension_numbers<[1], [0], [0], [1], [0, 0, 1, 1], [], []>} : vector<1x8xf32>, vector<8x32xf32>, vector<1x32xf32> -> vector<1x32xf32>
    %c0_19 = arith.constant 0 : index
    %c0_20 = arith.constant 0 : index
    %30 = vector.load %arg6[%c0_19, %c0_20] : memref<1x32xf32, #tpu.memory_space<vmem>>, vector<1x32xf32>
    %31 = arith.addf %29, %30 : vector<1x32xf32>
    %32 = arith.truncf %31 : vector<1x32xf32> to vector<1x32xbf16>
    %c0_21 = arith.constant 0 : index
    %c0_22 = arith.constant 0 : index
    %33 = vector.load %arg7[%c0_21, %c0_22] : memref<32x32xbf16, #tpu.memory_space<vmem>>, vector<32x32xbf16>
    %cst_23 = arith.constant dense<0.000000e+00> : vector<1x32xf32>
    %34 = tpu.matmul %32, %33, %cst_23 {dimension_numbers = #tpu.dot_dimension_numbers<[1], [0], [0], [1], [0, 0, 1, 1], [], []>} : vector<1x32xbf16>, vector<32x32xbf16>, vector<1x32xf32> -> vector<1x32xf32>
    %c0_24 = arith.constant 0 : index
    %c0_25 = arith.constant 0 : index
    %35 = vector.load %arg8[%c0_24, %c0_25] : memref<1x32xf32, #tpu.memory_space<vmem>>, vector<1x32xf32>
    %36 = arith.addf %34, %35 : vector<1x32xf32>
    %37 = math.tanh %36 : vector<1x32xf32>
    %c0_26 = arith.constant 0 : index
    %c0_27 = arith.constant 0 : index
    %c0_28 = arith.constant 0 : index
    %38 = vector.load %arg11[%c0_26, %c0_27, %c0_28] : memref<1x1x32xf32, #tpu.memory_space<vmem>>, vector<1x1x32xf32>
    %39 = vector.shape_cast %38 : vector<1x1x32xf32> to vector<1x32xf32>
    %40 = vector.shape_cast %37 : vector<1x32xf32> to vector<1x1x32xf32>
    tpu.vector_store %arg11[%c0_26, %c0_27, %c0_28], %40 {strides = array<i32>} : memref<1x1x32xf32, #tpu.memory_space<vmem>>, vector<1x1x32xf32>,
    return
  }
  func.func @transform_0(%arg0: i32) -> (i32, i32) {
    %c0_i32 = arith.constant 0 : i32
    %c0_i32_0 = arith.constant 0 : i32
    return %arg0, %c0_i32 : i32, i32
  }
  func.func @transform_1(%arg0: i32) -> (i32, i32, i32) {
    %c0_i32 = arith.constant 0 : i32
    %c0_i32_0 = arith.constant 0 : i32
    %c0_i32_1 = arith.constant 0 : i32
    return %arg0, %c0_i32, %c0_i32_0 : i32, i32, i32
  }
  func.func @transform_2(%arg0: i32) -> (i32, i32) {
    %c0_i32 = arith.constant 0 : i32
    %c0_i32_0 = arith.constant 0 : i32
    %c0_i32_1 = arith.constant 0 : i32
    return %c0_i32, %c0_i32_0 : i32, i32
  }
  func.func @transform_3(%arg0: i32) -> (i32, i32) {
    %c0_i32 = arith.constant 0 : i32
    %c0_i32_0 = arith.constant 0 : i32
    %c0_i32_1 = arith.constant 0 : i32
    return %c0_i32, %c0_i32_0 : i32, i32
  }
  func.func @transform_4(%arg0: i32) -> (i32, i32) {
    %c0_i32 = arith.constant 0 : i32
    %c0_i32_0 = arith.constant 0 : i32
    %c0_i32_1 = arith.constant 0 : i32
    return %c0_i32, %c0_i32_0 : i32, i32
  }
  func.func @transform_5(%arg0: i32) -> (i32, i32) {
    %c0_i32 = arith.constant 0 : i32
    %c0_i32_0 = arith.constant 0 : i32
    %c0_i32_1 = arith.constant 0 : i32
    return %c0_i32, %c0_i32_0 : i32, i32
  }
  func.func @transform_6(%arg0: i32) -> (i32, i32) {
    %c0_i32 = arith.constant 0 : i32
    %c0_i32_0 = arith.constant 0 : i32
    %c0_i32_1 = arith.constant 0 : i32
    return %c0_i32, %c0_i32_0 : i32, i32
  }
  func.func @transform_7(%arg0: i32) -> (i32, i32) {
    %c0_i32 = arith.constant 0 : i32
    %c0_i32_0 = arith.constant 0 : i32
    %c0_i32_1 = arith.constant 0 : i32
    return %c0_i32, %c0_i32_0 : i32, i32
  }
  func.func @transform_8(%arg0: i32) -> (i32, i32) {
    %c0_i32 = arith.constant 0 : i32
    %c0_i32_0 = arith.constant 0 : i32
    %c0_i32_1 = arith.constant 0 : i32
    return %c0_i32, %c0_i32_0 : i32, i32
  }
  func.func @transform_9(%arg0: i32) -> (i32, i32) {
    %c0_i32 = arith.constant 0 : i32
    %c0_i32_0 = arith.constant 0 : i32
    %c0_i32_1 = arith.constant 0 : i32
    return %c0_i32, %c0_i32_0 : i32, i32
  }
  func.func @transform_10(%arg0: i32) -> (i32, i32, i32) {
    %c0_i32 = arith.constant 0 : i32
    %c0_i32_0 = arith.constant 0 : i32
    %c0_i32_1 = arith.constant 0 : i32
    return %arg0, %c0_i32, %c0_i32_0 : i32, i32, i32
  }
}

</mosaic_0001>

<bundles_post_ra>
// kernel: tpu_custom_call.1
= control target key start
LH: loop header
LB: loop body
LE: loop exit
PB: predicated region body
PF: predicated region fallthrough
CT: control target
= control target key end

     0   :  { %s1386_s0 = inlined_call_operand.hbm [shape: f32[16,32], index: 0, kind: input, shape index: {}]   ;;  %s1387_s1 = inlined_call_operand.hbm [shape: f32[2,1,8], index: 1, kind: input, shape index: {}]   ;;  %s1388_s2 = inlined_call_operand.hbm [shape: bf16[8,32], index: 2, kind: input, shape index: {}]   ;;  %s1389_s3 = inlined_call_operand.vmem [shape: f32[8,1], index: 3, kind: input, shape index: {}]   ;;  %s1390_s4 = inlined_call_operand.hbm [shape: bf16[32,32], index: 4, kind: input, shape index: {}]   ;;  %s1391_s5 = inlined_call_operand.vmem [shape: f32[1,32], index: 5, kind: input, shape index: {}]   ;;  %s1392_s6 = inlined_call_operand.hbm [shape: bf16[32,32], index: 6, kind: input, shape index: {}]   ;;  %s1393_s7 = inlined_call_operand.vmem [shape: f32[1,32], index: 7, kind: input, shape index: {}]   ;;  %s1394_s8 = inlined_call_operand.vmem [shape: f32[8,32], index: 8, kind: input, shape index: {}]   ;;  %s1395_s9 = inlined_call_operand.vmem [shape: f32[1,8], index: 9, kind: input, shape index: {}]   ;;  %s1396_s10 = inlined_call_operand.hbm [shape: f32[2,1,32], index: 10, kind: output, shape index: {}]  }
   0x1   :  { %1403 = sst [smem:[#allocation23_spill]] %s1388_s2 }
   0x2   :  { %1404 = sst [smem:[#allocation24_spill]] %s1390_s4 }
   0x3   :  { %1405 = sst [smem:[#allocation25_spill]] %s1392_s6 }
   0x4   :  { %15 = vsyncpa [#allocation3], 0 }
   0x5   :  { %17 = vsyncpa [#allocation3 + $0x1], 0 }
   0x6   :  { %18 = vsyncpa [#allocation6], 0 }
   0x7   :  { %20 = vsyncpa [#allocation6 + $0x1], 0 }
   0x8   :  { %21 = vsyncpa [#allocation9], 0 }
   0x9   :  { %22 = vsyncpa [#allocation4], 0 }
   0xa   :  { %24 = vsyncpa [#allocation4 + $0x1], 0  ;;  %s1172_s13 = smov 0   ;;  %s1174_s14 = smov 0  }
   0xb   :  { %s1176_s15 = smov 0   ;;  %s1178_s16 = smov 0  }
   0xc LB: > { %1406 = sst [smem:[#allocation17_spill]] %s1097_s13  ;;  %s1193_s17 = sadd.s32 4294967295, %s1109_s16   ;;  %s1109_s16 = sphi %s1178_s16, %s1425_s16   ;;  %s1105_s15 = sphi %s1176_s15, %s1427_s15   ;;  %s1101_s14 = sphi %s1174_s14, %s1429_s14   ;;  %s1097_s13 = sphi %s1172_s13, %s1428_s13  }
   0xd   : > { %1407 = sst [smem:[#allocation18_spill]] %s1105_s15  ;;  %s748_s18 = sadd.s32 4294967294, %s1109_s16  }
   0xe   : > { %1408 = sst [smem:[#allocation19_spill]] %s1109_s16  ;;  %p50_p0 = scmp.ne.s32.totalorder %s1101_s14, %s1097_s13 }
   0xf   : > { %p51_p1 = scmp.eq.s32.totalorder %s1193_s17, 0  ;;  %p268_p2 = scmp.eq.s32.totalorder %s1193_s17, 1 }
  0x10   : > { %p274_p3 = scmp.eq.s32.totalorder %s748_s18, 1  ;;  %p749_p5 = scmp.ge.s32.totalorder %s1109_s16, 1 }
  0x11   : > { %p1202_p4 = por %p51_p1, %p50_p0  ;;  %p281_p7 = scmp.lt.s32.totalorder %s1109_s16, 3 }
  0x12   : > { %p1207_p6 = por %p274_p3, %p50_p0  ;;  %s1412_s2 = sld [smem:[#allocation23_spill]] }
  0x13   : > { %p1215_p8 = pnand %p749_p5, %p281_p7  ;;  %s1111_s25 = smov [#allocation7]  }
  0x14   : > { %s1410_s20 = scalar_select %p1207_p6, 1, 0 }
  0x15   : > { %p806_p10 = pneg %p1215_p8  ;;  %s295_s26 = sshll.u32 %s1111_s25, 4  ;;  %s296_s26 = int_to_ptr.vmem [resolvable:$true] %s295_s26 }
  0x16   : > { %1411 = sst [smem:[#allocation20_spill]] %s1410_s20  ;;  %s1112_s11 = smov [#allocation8]  }
  0x17   : > { %s1414_s4 = sld [smem:[#allocation24_spill]]  ;;  %p1227_p11 = pnand %p806_p10, %p51_p1 }
  0x18   : > { %s293_s23 = sshll.u32 %s1412_s2, 4  ;;  %s309_s12 = sshll.u32 %s1112_s11, 4  ;;  %s294_s23 = int_to_ptr.hbm [resolvable:$true] %s293_s23  ;;  %s310_s12 = int_to_ptr.vmem [resolvable:$true] %s309_s12 }
  0x19   : > { %809 = dma.hbm_to_vmem [thread:$0]  (!%p1227_p11), %s294_s23, 64, %s296_s26, [#allocation6]  }
  0x1a   : > { %s1113_s18 = smov 64   ;;  %s1114_s21 = smov 4  }
  0x1b   : > { %s1416_s6 = sld [smem:[#allocation25_spill]]  ;;  %s1115_s28 = smov [#allocation10]  }
  0x1c   : > { %s326_s11 = sshll.u32 %s1115_s28, 4  ;;  %s1241_s23 = sadd.s32 1, %s1109_s16   ;;  %s327_s11 = int_to_ptr.vmem [resolvable:$true] %s326_s11 }
  0x1d   : > { %s307_s29 = sshll.u32 %s1414_s4, 4  ;;  %1417 = sst [smem:[#allocation21_spill]] %s1241_s23  ;;  %s308_s29 = int_to_ptr.hbm [resolvable:$true] %s307_s29 }
  0x1e   : > { %812 = dma.hbm_to_vmem [thread:$0]  (!%p1227_p11), %s308_s29, 256, %s310_s12, [#allocation9], %s1113_s18, %s1113_s18, %s1114_s21  }
  0x1f   : > { %s34_s26 = ssub.s32 %s1109_s16, %s1241_s23  ;;  %s37_s2 = sadd.s32 1, %s1105_s15 }
  0x20   : > { %p35_p12 = scmp.eq.s32.totalorder %s34_s26, 0  ;;  %p44_p13 = scmp.ne.s32.totalorder %s1105_s15, %s1101_s14 }
  0x21   : > { %s324_s27 = sshll.u32 %s1416_s6, 4  ;;  %p45_p0 = scmp.eq.s32.totalorder %s1109_s16, 0  ;;  %s325_s27 = int_to_ptr.hbm [resolvable:$true] %s324_s27 }
  0x22   : > { %815 = dma.hbm_to_vmem [thread:$0]  (!%p1227_p11), %s325_s27, 256, %s327_s11, [#allocation9], %s1113_s18, %s1113_s18, %s1114_s21  }
  0x23   : > { %p830_p3 = scmp.lt.s32.totalorder %s1109_s16, 2  ;;  %p46_p5 = por %p45_p0, %p44_p13 }
  0x24   : > { %s1251_s29 = scalar_select %p35_p12, %s1105_s15, %s37_s2  }
  0x25   : > { %p1255_p7 = por %p268_p2, %p44_p13  ;;  %s1260_s30 = sand.u32 1, %s1105_s15  }
  0x26   : > { %1418 = sst [smem:[#allocation22_spill]] %s1251_s29  ;;  %s755_s18 = sshll.u32 %s1109_s16, 3 }
  0x27   : > { %s754_s21 = sshll.u32 %s1260_s30, 3  ;;  %s357_s27 = scalar_lea.hbm %s1386_s0, %s755_s18 }
  0x28   : > { %s359_s28 = sshll.u32 %s357_s27, 4  ;;  %s353_s11 = scalar_lea.vmem [#allocation2], %s754_s21  ;;  %s360_s28 = int_to_ptr.hbm [resolvable:$true] %s359_s28 }
  0x29   : > { %s361_s2 = sshll.u32 %s353_s11, 4  ;;  %p1269_p2 = pnand %p830_p3, %p46_p5  ;;  %s362_s2 = int_to_ptr.vmem [resolvable:$true] %s361_s2 }
  0x2a   : > { %s368_s4 = sand.u32 1, %s1109_s16   ;;  %s374_s15 = scalar_lea.hbm %s1387_s1, %s1109_s16 }
  0x2b   : > { %s350_s23 = scalar_lea.sflag [#allocation3], %s1260_s30  ;;  %s971_s22 = sshra.s32 %s360_s28, 4  ;;  %s972_s22 = int_to_ptr.hbm [resolvable:$true] %s971_s22 }
  0x2c   : > { %s973_s18 = scalar_lea.hbm %s972_s22, 8  ;;  %p975_p11 = pneg %p1269_p2 }
  0x2d   : > { %p974_p10 = scmp.ne.s32.totalorder %s972_s22, %s973_s18  ;;  %s978_s27 = scalar_lea.hbm %s1386_s0, 16 }
  0x2e   : > { %p979_p0 = scmp.lt.s32.totalorder %s972_s22, %s1386_s0  ;;  %p980_p3 = scmp.lt.s32.totalorder %s978_s27, %s973_s18 }
  0x2f   : > { %p976_p12 = pnand %p975_p11, %p974_p10 }
  0x30   : > { %p981_p5 = por %p980_p3, %p979_p0 }
  0x31   : > { %p977_p13 = pneg %p976_p12 }
  0x33   : > { %p982_p9 = pnand %p981_p5, %p977_p13 }
  0x35   : > { %985 = shalt.err (!%p982_p9)
}
  0x36   : > { %819 = dma.hbm_to_vmem [thread:$0]  (!%p1269_p2), %s360_s28, 128, %s362_s2, %s350_s23  }
  0x37   : > { %s376_s6 = sshll.u32 %s374_s15, 4  ;;  %s371_s29 = scalar_lea.vmem [#allocation5], %s1260_s30  ;;  %s377_s6 = int_to_ptr.hbm [resolvable:$true] %s376_s6 }
  0x38   : > { %s378_s16 = sshll.u32 %s371_s29, 4  ;;  %s369_s21 = scalar_lea.sflag [#allocation6], %s368_s4  ;;  %s379_s16 = int_to_ptr.vmem [resolvable:$true] %s378_s16 }
  0x39   : > { %s1001_s25 = sshra.s32 %s377_s6, 4  ;;  %s1008_s18 = scalar_lea.hbm %s1387_s1, 2  ;;  %s1002_s25 = int_to_ptr.hbm [resolvable:$true] %s1001_s25 }
  0x3a   : > { %s1003_s13 = scalar_lea.hbm %s1002_s25, 1  ;;  %p1009_p9 = scmp.lt.s32.totalorder %s1002_s25, %s1387_s1 }
  0x3b   : > { %p1004_p10 = scmp.ne.s32.totalorder %s1002_s25, %s1003_s13  ;;  %p1010_p0 = scmp.lt.s32.totalorder %s1008_s18, %s1003_s13 }
  0x3d   : > { %p1006_p12 = pnand %p1004_p10, %p975_p11  ;;  %p1011_p3 = por %p1010_p0, %p1009_p9 }
  0x3f   : > { %p1007_p13 = pneg %p1006_p12 }
  0x41   : > { %p1012_p5 = pnand %p1011_p3, %p1007_p13 }
  0x43   : > { %1015 = shalt.err (!%p1012_p5)
}
  0x44   : > { %822 = dma.hbm_to_vmem [thread:$0]  (!%p1269_p2), %s377_s6, 16, %s379_s16, %s369_s21  }
  0x45   : > { %387 = sbr.rel (%p1215_p8) target bundleno = 1022 (0x3fe), region = 60  ;;  %s1307_s4 = sand.u32 (!%p1215_p8), 1, %s1101_s14  }
  0x46   : > { %s757_s15 = sshll.u32 (!%p1215_p8), %s1307_s4, 3  ;;  %s390_s30 = scalar_lea.sflag (!%p1215_p8), [#allocation3], %s1307_s4 }
  0x47   : > { %s393_s28 = scalar_lea.vmem (!%p1215_p8), [#allocation2], %s757_s15 }
  0x4a   : > { %1076 = dma.done.wait (%p1202_p4), %s390_s30, 128  }
  0x4b   : > { %1078 = vsyncadd (%p1202_p4), %s390_s30, 4294967168  ;;  %s399_s13 = sand.u32 1, %s1193_s17   ;;  %s402_s24 = scalar_lea.vmem [#allocation5], %s1307_s4 }
  0x4c   : > { %s400_s16 = scalar_lea.sflag [#allocation6], %s399_s13 }
  0x4d   : > { %1080 = dma.done.wait (%p1202_p4), %s400_s16, 16  }
  0x4e   : > { %1082 = vsyncadd (%p1202_p4), %s400_s16, 4294967280 }
  0x4f   : > { %1084 = dma.done.wait (%p51_p1), [#allocation6], 64  }
  0x50   : > { %1086 = vsyncadd (%p51_p1), [#allocation6], 4294967232 }
  0x51   : > { %1088 = dma.done.wait (%p51_p1), [#allocation9], 512  }
  0x52   : > { %1090 = vsyncadd (%p51_p1), [#allocation9], 4294966784  ;;  %v1116_v0 = vmov 0   ;;  %v459_v1 = vld [vmem:[%s393_s28] sm:$0xff]  ;;  %vm469_vm0 = vcmask 261120   ;;  %vm493_vm1 = vcmask 64512   ;;  %s631_s23 = scalar_lea.hbm %s1396_s10, %s1193_s17 }
  0x53   : > { %873 = vset.pattern.permute.xlu0 %v1116_v0  ;;  %v463_v2 = vld [vmem:[%s1389_s3] sm:$0xff]  ;;  %v460_v3 = vpack.c.bf16 %v459_v1, %v459_v1  ;;  %v462_v5 = vld [vmem:[#allocation7] sm:$0xf]  ;;  %vm509_vm2 = vcmask 1043456   ;;  %v784_v24 = vld [vmem:[#allocation8] sm:$0xff]  ;;  %s457_s15 = scalar_lea.vmem [#allocation11], %s1307_s4 }
  0x54   : > { %466 = vperm.xlu0 %873, %v463_v2   ;;  %v874_v7 = vld [vmem:[%s402_s24] ss:$0 sm:$0xff]  ;;  %v787_v32 = vld [vmem:[#allocation10 + $0x8] sm:$0xff]  ;;  %v786_v34 = vld [vmem:[#allocation10] sm:$0xff]  ;;  %s633_s30 = sshll.u32 %s457_s15, 4  ;;  %s635_s28 = sshll.u32 %s631_s23, 4  ;;  %s634_s30 = int_to_ptr.vmem [resolvable:$true] %s633_s30  ;;  %s636_s28 = int_to_ptr.hbm [resolvable:$true] %s635_s28 }
  0x55   : > { %v474_v4 = vsel %vm469_vm0, %v460_v3, 0  ;;  %v510_v18 = vsel %vm509_vm2, %v460_v3, 0  ;;  %v785_v19 = vld [vmem:[#allocation8 + $0x8] sm:$0xff]  ;;  %vm620_vm3 = vcmask 253952   ;;  %s623_s13 = scalar_lea.sflag [#allocation4], %s1307_s4  ;;  %s1045_s16 = sshra.s32 %s636_s28, 4  ;;  %s1046_s16 = int_to_ptr.hbm [resolvable:$true] %s1045_s16 }
  0x56   : > { %483 = vmatpush.bf16.xpose.msra.mxu0 %v474_v4  ;;  %519 = vmatpush.bf16.msra.mxu1 %v510_v18  ;;  %v559_v28 = vld [vmem:[%s1394_s8] sm:$0xff]  ;;  %s1047_s24 = scalar_lea.hbm %s1046_s16, 1  ;;  %s1051_s26 = scalar_lea.hbm %s1396_s10, 2 }
  0x57   : > { %551 = vmatpush.bf16.msra.mxu2 %v785_v19  ;;  %v558_v31 = vld [vmem:[%s1395_s9] sm:$0x1]  ;;  %p1048_p1 = scmp.ne.s32.totalorder %s1046_s16, %s1047_s24  ;;  %p1052_p2 = scmp.lt.s32.totalorder %s1046_s16, %s1396_s10 }
  0x58   : > { %v561_v35 = vld [vmem:[%s1391_s5] sm:$0x1]  ;;  %p1053_p11 = scmp.lt.s32.totalorder %s1051_s26, %s1047_s24 }
  0x59   : > { %v590_v39 = vld [vmem:[%s1393_s7] sm:$0x1]  ;;  %p1049_p4 = pnand %p1048_p1, %p1255_p7 }
  0x5a   : > { %p1054_p10 = por %p1053_p11, %p1052_p2 }
  0x5b   : > { %552 = vmatpush.bf16.msra.mxu2 %v784_v24  ;;  %p1050_p8 = pneg %p1049_p4 }
  0x5d   : > { %761 = vmatmul.msk.bf16.vlgmr.msra.gmra.mxu0 %vm469_vm0, %v462_v5  ;;  %p1055_p12 = pnand %p1054_p10, %p1050_p8 }
  0xc6   : > { %v467_v6 = vpop.permute.xlu0 %466 }
  0xda   : > { %v485_v8 = vpop.f32.mrf.mxu0 }
  0xdb   : > { %v486_v9 = vadd.f32 %v485_v8, %v467_v6 }
  0xdd   : > { %v492_v10 = vadd.f32 %v874_v7, %v486_v9 }
  0xdf   : > { %v494_v11 = vsel %vm493_vm1, %v492_v10, -inf }
  0xe0   : > { %495 = vmax.xlane.f32.xlu0 %v494_v11 }
  0xe2   : > { %v487_v12 = vpop.f32.mrf.mxu0 }
 0x153   : > { %v496_v13 = vpop.xlane.xlu0 %495 }
 0x154   : > { %v497_v14 = vsub.f32 %v492_v10, %v496_v13 }
 0x156   : > { %v498_v15 = vmul.f32 1.442695, %v497_v14 }
 0x158   : > { %875 = vpow2.f32 %v498_v15 }
 0x15e   : > { %v876_v16 = vpop.eup %875 }
 0x15f   : > { %v500_v17 = vsel %vm493_vm1, %v876_v16, 0.0 }
 0x160   : > { %501 = vadd.xlane.f32.xlu1 %v500_v17 }
 0x1d3   : > { %v502_v20 = vpop.xlane.xlu1 %501 }
 0x1d4   : > { %877 = vrcp.f32 %v502_v20 }
 0x1da   : > { %v878_v21 = vpop.eup %877 }
 0x1db   : > { %v504_v22 = vmul.f32 %v878_v21, %v876_v16 }
 0x1dd   : > { %v505_v23 = vpack.c.bf16 %v504_v22, %v504_v22 }
 0x1df   : > { %762 = vmatmul.msk.bf16.vlgmr.msra.gmra.mxu1 %vm493_vm1, %v505_v23 }
 0x25c   : > { %v521_v25 = vpop.f32.mrf.mxu1 }
 0x25d   : > { %v525_v26 = vpack.c.bf16 %v521_v25, %v521_v25 }
 0x25f   : > { %771 = vmatmul.msk.bf16.vlgmr.msra.gmra.mxu2 %vm469_vm0, %v525_v26 }
 0x264   : > { %v523_v27 = vpop.f32.mrf.mxu1 }
 0x2e2   : > { %v554_v29 = vpop.f32.mrf.mxu2 }
 0x2e3   : > { %v560_v30 = vmul.f32 %v559_v28, %v554_v29 }
 0x2e5   : > { %580 = vmatpush.msra.mxu3 %v560_v30 }
 0x2e6   : > { %772 = vmatmul.msk.f32.vlgmr.msra.gmra.mxu3 %vm493_vm1, %v558_v31 }
 0x2e7   : > { %612 = vmatpush.bf16.msrb.mxu3 %v787_v32 }
 0x2ea   : > { %v556_v33 = vpop.f32.mrf.mxu2 }
 0x2eb   : > { %613 = vmatpush.bf16.msrb.mxu3 %v786_v34 }
 0x369   : > { %v582_v36 = vpop.f32.mrf.mxu3 }
 0x36a   : > { %v583_v37 = vadd.f32 %v582_v36, %v561_v35 }
 0x36c   : > { %v585_v38 = vpack.c.bf16 %v583_v37, %v583_v37 }
 0x36e   : > { %781 = vmatmul.msk.bf16.vlgmr.msrb.gmra.mxu3 %vm469_vm0, %v585_v38 }
 0x3f1   : > { %v615_v40 = vpop.f32.mrf.mxu3 }
 0x3f2   : > { %v616_v41 = vadd.f32 %v615_v40, %v590_v39 }
 0x3f4   : > { %879 = vtanh.f32 %v616_v41 }
 0x3f9   : > { %v617_v42 = vpop.f32.mrf.mxu3 }
 0x3fa   : > { %v880_v43 = vpop.eup %879 }
 0x3fb   : > { %621 = vst.msk [vmem:[%s457_s15] sm:$0x1] %vm620_vm3, %v880_v43 }
 0x3fc   : > { %1058 = shalt.err (!%p1055_p12)
}
 0x3fd   : > { %804 = dma.vmem_to_hbm [thread:$0]  (%p1255_p7), %s634_s30, 16, %s636_s28, %s623_s13  }
 0x3fe PF: > { %s1421_s4 = sld [smem:[#allocation17_spill]] }
 0x3ff   : > { %s1423_s29 = sld [smem:[#allocation19_spill]] }
 0x404   : > { %s647_s21 = sand.u32 1, %s1421_s4  }
 0x405   : > { %p1424_p13 = scmp.ge.s32.totalorder %s1423_s29, 2  ;;  %s648_s25 = scalar_lea.sflag [#allocation4], %s647_s21 }
 0x407   : > { %p824_p9 = pnand %p1424_p13, %p1207_p6 }
 0x409   : > { %p825_p0 = pneg %p824_p9 }
 0x40b   : > { %1092 = dma.done.wait (%p825_p0), %s648_s25, 16  }
 0x40c   : > { %1094 = vsyncadd (%p825_p0), %s648_s25, 4294967280  ;;  %s1425_s16 = sld [smem:[#allocation21_spill]]  ;;  %s1428_s13 = smov %s1101_s14 }
 0x40d   : > { %s1426_s20 = sld [smem:[#allocation18_spill]] }
 0x40e   : > { %s1427_s15 = sld [smem:[#allocation22_spill]] }
 0x412   : > { %p27_p3 = scmp.ge.s32.totalorder %s1425_s16, 4  }
 0x413   : > { %s1429_s14 = smov %s1426_s20 }
 0x414   :  { %29 = sbr.rel (!%p27_p3) target bundleno = 12 (0xc), region = 130 }
 0x419   :  { %653 = vsyncpa [#allocation3], 1 }
 0x41a   :  { %655 = vsyncpa [#allocation3 + $0x1], 1 }
 0x41b   :  { %656 = vsyncpa [#allocation6], 1 }
 0x41c   :  { %658 = vsyncpa [#allocation6 + $0x1], 1 }
 0x41d   :  { %659 = vsyncpa [#allocation9], 1 }
 0x41e   :  { %660 = vsyncpa [#allocation4], 1 }
 0x41f   :  { %662 = vsyncpa [#allocation4 + $0x1], 1 }

// kernel: tpu_custom_call.1
= control target key start
LH: loop header
LB: loop body
LE: loop exit
PB: predicated region body
PF: predicated region fallthrough
CT: control target
= control target key end

     0   :  { %s1386_s0 = inlined_call_operand.hbm [shape: f32[16,32], index: 0, kind: input, shape index: {}]   ;;  %s1387_s1 = inlined_call_operand.hbm [shape: f32[2,1,8], index: 1, kind: input, shape index: {}]   ;;  %s1388_s2 = inlined_call_operand.hbm [shape: bf16[8,32], index: 2, kind: input, shape index: {}]   ;;  %s1389_s3 = inlined_call_operand.vmem [shape: f32[8,1], index: 3, kind: input, shape index: {}]   ;;  %s1390_s4 = inlined_call_operand.hbm [shape: bf16[32,32], index: 4, kind: input, shape index: {}]   ;;  %s1391_s5 = inlined_call_operand.vmem [shape: f32[1,32], index: 5, kind: input, shape index: {}]   ;;  %s1392_s6 = inlined_call_operand.hbm [shape: bf16[32,32], index: 6, kind: input, shape index: {}]   ;;  %s1393_s7 = inlined_call_operand.vmem [shape: f32[1,32], index: 7, kind: input, shape index: {}]   ;;  %s1394_s8 = inlined_call_operand.vmem [shape: f32[8,32], index: 8, kind: input, shape index: {}]   ;;  %s1395_s9 = inlined_call_operand.vmem [shape: f32[1,8], index: 9, kind: input, shape index: {}]   ;;  %s1396_s10 = inlined_call_operand.hbm [shape: f32[2,1,32], index: 10, kind: output, shape index: {}]  }
   0x1   :  { %1403 = sst [smem:[#allocation23_spill]] %s1388_s2 }
   0x2   :  { %1404 = sst [smem:[#allocation24_spill]] %s1390_s4 }
   0x3   :  { %1405 = sst [smem:[#allocation25_spill]] %s1392_s6 }
   0x4   :  { %15 = vsyncpa [#allocation3], 0 }
   0x5   :  { %17 = vsyncpa [#allocation3 + $0x1], 0 }
   0x6   :  { %18 = vsyncpa [#allocation6], 0 }
   0x7   :  { %20 = vsyncpa [#allocation6 + $0x1], 0 }
   0x8   :  { %21 = vsyncpa [#allocation9], 0 }
   0x9   :  { %22 = vsyncpa [#allocation4], 0 }
   0xa   :  { %24 = vsyncpa [#allocation4 + $0x1], 0  ;;  %s1172_s13 = smov 0   ;;  %s1174_s14 = smov 0  }
   0xb   :  { %s1176_s15 = smov 0   ;;  %s1178_s16 = smov 0  }
   0xc LB: > { %1406 = sst [smem:[#allocation17_spill]] %s1097_s13  ;;  %s1193_s17 = sadd.s32 4294967295, %s1109_s16   ;;  %s1109_s16 = sphi %s1178_s16, %s1425_s16   ;;  %s1105_s15 = sphi %s1176_s15, %s1427_s15   ;;  %s1101_s14 = sphi %s1174_s14, %s1429_s14   ;;  %s1097_s13 = sphi %s1172_s13, %s1428_s13  }
   0xd   : > { %1407 = sst [smem:[#allocation18_spill]] %s1105_s15  ;;  %s748_s18 = sadd.s32 4294967294, %s1109_s16  }
   0xe   : > { %1408 = sst [smem:[#allocation19_spill]] %s1109_s16  ;;  %p50_p0 = scmp.ne.s32.totalorder %s1101_s14, %s1097_s13 }
   0xf   : > { %p51_p1 = scmp.eq.s32.totalorder %s1193_s17, 0  ;;  %p268_p2 = scmp.eq.s32.totalorder %s1193_s17, 1 }
  0x10   : > { %p274_p3 = scmp.eq.s32.totalorder %s748_s18, 1  ;;  %p749_p5 = scmp.ge.s32.totalorder %s1109_s16, 1 }
  0x11   : > { %p1202_p4 = por %p51_p1, %p50_p0  ;;  %p281_p7 = scmp.lt.s32.totalorder %s1109_s16, 3 }
  0x12   : > { %p1207_p6 = por %p274_p3, %p50_p0  ;;  %s1412_s2 = sld [smem:[#allocation23_spill]] }
  0x13   : > { %p1215_p8 = pnand %p749_p5, %p281_p7  ;;  %s1111_s25 = smov [#allocation7]  }
  0x14   : > { %s1410_s20 = scalar_select %p1207_p6, 1, 0 }
  0x15   : > { %p806_p10 = pneg %p1215_p8  ;;  %s295_s26 = sshll.u32 %s1111_s25, 4  ;;  %s296_s26 = int_to_ptr.vmem [resolvable:$true] %s295_s26 }
  0x16   : > { %1411 = sst [smem:[#allocation20_spill]] %s1410_s20  ;;  %s1112_s11 = smov [#allocation8]  }
  0x17   : > { %s1414_s4 = sld [smem:[#allocation24_spill]]  ;;  %p1227_p11 = pnand %p806_p10, %p51_p1 }
  0x18   : > { %s293_s23 = sshll.u32 %s1412_s2, 4  ;;  %s309_s12 = sshll.u32 %s1112_s11, 4  ;;  %s294_s23 = int_to_ptr.hbm [resolvable:$true] %s293_s23  ;;  %s310_s12 = int_to_ptr.vmem [resolvable:$true] %s309_s12 }
  0x19   : > { %809 = dma.hbm_to_vmem [thread:$0]  (!%p1227_p11), %s294_s23, 64, %s296_s26, [#allocation6]  }
  0x1a   : > { %s1113_s18 = smov 64   ;;  %s1114_s21 = smov 4  }
  0x1b   : > { %s1416_s6 = sld [smem:[#allocation25_spill]]  ;;  %s1115_s28 = smov [#allocation10]  }
  0x1c   : > { %s326_s11 = sshll.u32 %s1115_s28, 4  ;;  %s1241_s23 = sadd.s32 1, %s1109_s16   ;;  %s327_s11 = int_to_ptr.vmem [resolvable:$true] %s326_s11 }
  0x1d   : > { %s307_s29 = sshll.u32 %s1414_s4, 4  ;;  %1417 = sst [smem:[#allocation21_spill]] %s1241_s23  ;;  %s308_s29 = int_to_ptr.hbm [resolvable:$true] %s307_s29 }
  0x1e   : > { %812 = dma.hbm_to_vmem [thread:$0]  (!%p1227_p11), %s308_s29, 256, %s310_s12, [#allocation9], %s1113_s18, %s1113_s18, %s1114_s21  }
  0x1f   : > { %s34_s26 = ssub.s32 %s1109_s16, %s1241_s23  ;;  %s37_s2 = sadd.s32 1, %s1105_s15 }
  0x20   : > { %p35_p12 = scmp.eq.s32.totalorder %s34_s26, 0  ;;  %p44_p13 = scmp.ne.s32.totalorder %s1105_s15, %s1101_s14 }
  0x21   : > { %s324_s27 = sshll.u32 %s1416_s6, 4  ;;  %p45_p0 = scmp.eq.s32.totalorder %s1109_s16, 0  ;;  %s325_s27 = int_to_ptr.hbm [resolvable:$true] %s324_s27 }
  0x22   : > { %815 = dma.hbm_to_vmem [thread:$0]  (!%p1227_p11), %s325_s27, 256, %s327_s11, [#allocation9], %s1113_s18, %s1113_s18, %s1114_s21  }
  0x23   : > { %p830_p3 = scmp.lt.s32.totalorder %s1109_s16, 2  ;;  %p46_p5 = por %p45_p0, %p44_p13 }
  0x24   : > { %s1251_s29 = scalar_select %p35_p12, %s1105_s15, %s37_s2  }
  0x25   : > { %p1255_p7 = por %p268_p2, %p44_p13  ;;  %s1260_s30 = sand.u32 1, %s1105_s15  }
  0x26   : > { %1418 = sst [smem:[#allocation22_spill]] %s1251_s29  ;;  %s755_s18 = sshll.u32 %s1109_s16, 3 }
  0x27   : > { %s754_s21 = sshll.u32 %s1260_s30, 3  ;;  %s357_s27 = scalar_lea.hbm %s1386_s0, %s755_s18 }
  0x28   : > { %s359_s28 = sshll.u32 %s357_s27, 4  ;;  %s353_s11 = scalar_lea.vmem [#allocation2], %s754_s21  ;;  %s360_s28 = int_to_ptr.hbm [resolvable:$true] %s359_s28 }
  0x29   : > { %s361_s2 = sshll.u32 %s353_s11, 4  ;;  %p1269_p2 = pnand %p830_p3, %p46_p5  ;;  %s362_s2 = int_to_ptr.vmem [resolvable:$true] %s361_s2 }
  0x2a   : > { %s368_s4 = sand.u32 1, %s1109_s16   ;;  %s374_s15 = scalar_lea.hbm %s1387_s1, %s1109_s16 }
  0x2b   : > { %s350_s23 = scalar_lea.sflag [#allocation3], %s1260_s30  ;;  %s971_s22 = sshra.s32 %s360_s28, 4  ;;  %s972_s22 = int_to_ptr.hbm [resolvable:$true] %s971_s22 }
  0x2c   : > { %s973_s18 = scalar_lea.hbm %s972_s22, 8  ;;  %p975_p11 = pneg %p1269_p2 }
  0x2d   : > { %p974_p10 = scmp.ne.s32.totalorder %s972_s22, %s973_s18  ;;  %s978_s27 = scalar_lea.hbm %s1386_s0, 16 }
  0x2e   : > { %p979_p0 = scmp.lt.s32.totalorder %s972_s22, %s1386_s0  ;;  %p980_p3 = scmp.lt.s32.totalorder %s978_s27, %s973_s18 }
  0x2f   : > { %p976_p12 = pnand %p975_p11, %p974_p10 }
  0x30   : > { %p981_p5 = por %p980_p3, %p979_p0 }
  0x31   : > { %p977_p13 = pneg %p976_p12 }
  0x33   : > { %p982_p9 = pnand %p981_p5, %p977_p13 }
  0x35   : > { %985 = shalt.err (!%p982_p9)
}
  0x36   : > { %819 = dma.hbm_to_vmem [thread:$0]  (!%p1269_p2), %s360_s28, 128, %s362_s2, %s350_s23  }
  0x37   : > { %s376_s6 = sshll.u32 %s374_s15, 4  ;;  %s371_s29 = scalar_lea.vmem [#allocation5], %s1260_s30  ;;  %s377_s6 = int_to_ptr.hbm [resolvable:$true] %s376_s6 }
  0x38   : > { %s378_s16 = sshll.u32 %s371_s29, 4  ;;  %s369_s21 = scalar_lea.sflag [#allocation6], %s368_s4  ;;  %s379_s16 = int_to_ptr.vmem [resolvable:$true] %s378_s16 }
  0x39   : > { %s1001_s25 = sshra.s32 %s377_s6, 4  ;;  %s1008_s18 = scalar_lea.hbm %s1387_s1, 2  ;;  %s1002_s25 = int_to_ptr.hbm [resolvable:$true] %s1001_s25 }
  0x3a   : > { %s1003_s13 = scalar_lea.hbm %s1002_s25, 1  ;;  %p1009_p9 = scmp.lt.s32.totalorder %s1002_s25, %s1387_s1 }
  0x3b   : > { %p1004_p10 = scmp.ne.s32.totalorder %s1002_s25, %s1003_s13  ;;  %p1010_p0 = scmp.lt.s32.totalorder %s1008_s18, %s1003_s13 }
  0x3d   : > { %p1006_p12 = pnand %p1004_p10, %p975_p11  ;;  %p1011_p3 = por %p1010_p0, %p1009_p9 }
  0x3f   : > { %p1007_p13 = pneg %p1006_p12 }
  0x41   : > { %p1012_p5 = pnand %p1011_p3, %p1007_p13 }
  0x43   : > { %1015 = shalt.err (!%p1012_p5)
}
  0x44   : > { %822 = dma.hbm_to_vmem [thread:$0]  (!%p1269_p2), %s377_s6, 16, %s379_s16, %s369_s21  }
  0x45   : > { %387 = sbr.rel (%p1215_p8) target bundleno = 1022 (0x3fe), region = 60  ;;  %s1307_s4 = sand.u32 (!%p1215_p8), 1, %s1101_s14  }
  0x46   : > { %s757_s15 = sshll.u32 (!%p1215_p8), %s1307_s4, 3  ;;  %s390_s30 = scalar_lea.sflag (!%p1215_p8), [#allocation3], %s1307_s4 }
  0x47   : > { %s393_s28 = scalar_lea.vmem (!%p1215_p8), [#allocation2], %s757_s15 }
  0x4a   : > { %1076 = dma.done.wait (%p1202_p4), %s390_s30, 128  }
  0x4b   : > { %1078 = vsyncadd (%p1202_p4), %s390_s30, 4294967168  ;;  %s399_s13 = sand.u32 1, %s1193_s17   ;;  %s402_s24 = scalar_lea.vmem [#allocation5], %s1307_s4 }
  0x4c   : > { %s400_s16 = scalar_lea.sflag [#allocation6], %s399_s13 }
  0x4d   : > { %1080 = dma.done.wait (%p1202_p4), %s400_s16, 16  }
  0x4e   : > { %1082 = vsyncadd (%p1202_p4), %s400_s16, 4294967280 }
  0x4f   : > { %1084 = dma.done.wait (%p51_p1), [#allocation6], 64  }
  0x50   : > { %1086 = vsyncadd (%p51_p1), [#allocation6], 4294967232 }
  0x51   : > { %1088 = dma.done.wait (%p51_p1), [#allocation9], 512  }
  0x52   : > { %1090 = vsyncadd (%p51_p1), [#allocation9], 4294966784  ;;  %v1116_v0 = vmov 0   ;;  %v459_v1 = vld [vmem:[%s393_s28] sm:$0xff]  ;;  %vm469_vm0 = vcmask 261120   ;;  %vm493_vm1 = vcmask 64512   ;;  %s631_s23 = scalar_lea.hbm %s1396_s10, %s1193_s17 }
  0x53   : > { %873 = vset.pattern.permute.xlu0 %v1116_v0  ;;  %v463_v2 = vld [vmem:[%s1389_s3] sm:$0xff]  ;;  %v460_v3 = vpack.c.bf16 %v459_v1, %v459_v1  ;;  %v462_v5 = vld [vmem:[#allocation7] sm:$0xf]  ;;  %vm509_vm2 = vcmask 1043456   ;;  %v784_v24 = vld [vmem:[#allocation8] sm:$0xff]  ;;  %s457_s15 = scalar_lea.vmem [#allocation11], %s1307_s4 }
  0x54   : > { %466 = vperm.xlu0 %873, %v463_v2   ;;  %v874_v7 = vld [vmem:[%s402_s24] ss:$0 sm:$0xff]  ;;  %v787_v32 = vld [vmem:[#allocation10 + $0x8] sm:$0xff]  ;;  %v786_v34 = vld [vmem:[#allocation10] sm:$0xff]  ;;  %s633_s30 = sshll.u32 %s457_s15, 4  ;;  %s635_s28 = sshll.u32 %s631_s23, 4  ;;  %s634_s30 = int_to_ptr.vmem [resolvable:$true] %s633_s30  ;;  %s636_s28 = int_to_ptr.hbm [resolvable:$true] %s635_s28 }
  0x55   : > { %v474_v4 = vsel %vm469_vm0, %v460_v3, 0  ;;  %v510_v18 = vsel %vm509_vm2, %v460_v3, 0  ;;  %v785_v19 = vld [vmem:[#allocation8 + $0x8] sm:$0xff]  ;;  %vm620_vm3 = vcmask 253952   ;;  %s623_s13 = scalar_lea.sflag [#allocation4], %s1307_s4  ;;  %s1045_s16 = sshra.s32 %s636_s28, 4  ;;  %s1046_s16 = int_to_ptr.hbm [resolvable:$true] %s1045_s16 }
  0x56   : > { %483 = vmatpush.bf16.xpose.msra.mxu0 %v474_v4  ;;  %519 = vmatpush.bf16.msra.mxu1 %v510_v18  ;;  %v559_v28 = vld [vmem:[%s1394_s8] sm:$0xff]  ;;  %s1047_s24 = scalar_lea.hbm %s1046_s16, 1  ;;  %s1051_s26 = scalar_lea.hbm %s1396_s10, 2 }
  0x57   : > { %551 = vmatpush.bf16.msra.mxu2 %v785_v19  ;;  %v558_v31 = vld [vmem:[%s1395_s9] sm:$0x1]  ;;  %p1048_p1 = scmp.ne.s32.totalorder %s1046_s16, %s1047_s24  ;;  %p1052_p2 = scmp.lt.s32.totalorder %s1046_s16, %s1396_s10 }
  0x58   : > { %v561_v35 = vld [vmem:[%s1391_s5] sm:$0x1]  ;;  %p1053_p11 = scmp.lt.s32.totalorder %s1051_s26, %s1047_s24 }
  0x59   : > { %v590_v39 = vld [vmem:[%s1393_s7] sm:$0x1]  ;;  %p1049_p4 = pnand %p1048_p1, %p1255_p7 }
  0x5a   : > { %p1054_p10 = por %p1053_p11, %p1052_p2 }
  0x5b   : > { %552 = vmatpush.bf16.msra.mxu2 %v784_v24  ;;  %p1050_p8 = pneg %p1049_p4 }
  0x5d   : > { %761 = vmatmul.msk.bf16.vlgmr.msra.gmra.mxu0 %vm469_vm0, %v462_v5  ;;  %p1055_p12 = pnand %p1054_p10, %p1050_p8 }
  0xc6   : > { %v467_v6 = vpop.permute.xlu0 %466 }
  0xda   : > { %v485_v8 = vpop.f32.mrf.mxu0 }
  0xdb   : > { %v486_v9 = vadd.f32 %v485_v8, %v467_v6 }
  0xdd   : > { %v492_v10 = vadd.f32 %v874_v7, %v486_v9 }
  0xdf   : > { %v494_v11 = vsel %vm493_vm1, %v492_v10, -inf }
  0xe0   : > { %495 = vmax.xlane.f32.xlu0 %v494_v11 }
  0xe2   : > { %v487_v12 = vpop.f32.mrf.mxu0 }
 0x153   : > { %v496_v13 = vpop.xlane.xlu0 %495 }
 0x154   : > { %v497_v14 = vsub.f32 %v492_v10, %v496_v13 }
 0x156   : > { %v498_v15 = vmul.f32 1.442695, %v497_v14 }
 0x158   : > { %875 = vpow2.f32 %v498_v15 }
 0x15e   : > { %v876_v16 = vpop.eup %875 }
 0x15f   : > { %v500_v17 = vsel %vm493_vm1, %v876_v16, 0.0 }
 0x160   : > { %501 = vadd.xlane.f32.xlu1 %v500_v17 }
 0x1d3   : > { %v502_v20 = vpop.xlane.xlu1 %501 }
 0x1d4   : > { %877 = vrcp.f32 %v502_v20 }
 0x1da   : > { %v878_v21 = vpop.eup %877 }
 0x1db   : > { %v504_v22 = vmul.f32 %v878_v21, %v876_v16 }
 0x1dd   : > { %v505_v23 = vpack.c.bf16 %v504_v22, %v504_v22 }
 0x1df   : > { %762 = vmatmul.msk.bf16.vlgmr.msra.gmra.mxu1 %vm493_vm1, %v505_v23 }
 0x25c   : > { %v521_v25 = vpop.f32.mrf.mxu1 }
 0x25d   : > { %v525_v26 = vpack.c.bf16 %v521_v25, %v521_v25 }
 0x25f   : > { %771 = vmatmul.msk.bf16.vlgmr.msra.gmra.mxu2 %vm469_vm0, %v525_v26 }
 0x264   : > { %v523_v27 = vpop.f32.mrf.mxu1 }
 0x2e2   : > { %v554_v29 = vpop.f32.mrf.mxu2 }
 0x2e3   : > { %v560_v30 = vmul.f32 %v559_v28, %v554_v29 }
 0x2e5   : > { %580 = vmatpush.msra.mxu3 %v560_v30 }
 0x2e6   : > { %772 = vmatmul.msk.f32.vlgmr.msra.gmra.mxu3 %vm493_vm1, %v558_v31 }
 0x2e7   : > { %612 = vmatpush.bf16.msrb.mxu3 %v787_v32 }
 0x2ea   : > { %v556_v33 = vpop.f32.mrf.mxu2 }
 0x2eb   : > { %613 = vmatpush.bf16.msrb.mxu3 %v786_v34 }
 0x369   : > { %v582_v36 = vpop.f32.mrf.mxu3 }
 0x36a   : > { %v583_v37 = vadd.f32 %v582_v36, %v561_v35 }
 0x36c   : > { %v585_v38 = vpack.c.bf16 %v583_v37, %v583_v37 }
 0x36e   : > { %781 = vmatmul.msk.bf16.vlgmr.msrb.gmra.mxu3 %vm469_vm0, %v585_v38 }
 0x3f1   : > { %v615_v40 = vpop.f32.mrf.mxu3 }
 0x3f2   : > { %v616_v41 = vadd.f32 %v615_v40, %v590_v39 }
 0x3f4   : > { %879 = vtanh.f32 %v616_v41 }
 0x3f9   : > { %v617_v42 = vpop.f32.mrf.mxu3 }
 0x3fa   : > { %v880_v43 = vpop.eup %879 }
 0x3fb   : > { %621 = vst.msk [vmem:[%s457_s15] sm:$0x1] %vm620_vm3, %v880_v43 }
 0x3fc   : > { %1058 = shalt.err (!%p1055_p12)
}
 0x3fd   : > { %804 = dma.vmem_to_hbm [thread:$0]  (%p1255_p7), %s634_s30, 16, %s636_s28, %s623_s13  }
 0x3fe PF: > { %s1421_s4 = sld [smem:[#allocation17_spill]] }
 0x3ff   : > { %s1423_s29 = sld [smem:[#allocation19_spill]] }
 0x404   : > { %s647_s21 = sand.u32 1, %s1421_s4  }
 0x405   : > { %p1424_p13 = scmp.ge.s32.totalorder %s1423_s29, 2  ;;  %s648_s25 = scalar_lea.sflag [#allocation4], %s647_s21 }
 0x407   : > { %p824_p9 = pnand %p1424_p13, %p1207_p6 }
 0x409   : > { %p825_p0 = pneg %p824_p9 }
 0x40b   : > { %1092 = dma.done.wait (%p825_p0), %s648_s25, 16  }
 0x40c   : > { %1094 = vsyncadd (%p825_p0), %s648_s25, 4294967280  ;;  %s1425_s16 = sld [smem:[#allocation21_spill]]  ;;  %s1428_s13 = smov %s1101_s14 }
 0x40d   : > { %s1426_s20 = sld [smem:[#allocation18_spill]] }
 0x40e   : > { %s1427_s15 = sld [smem:[#allocation22_spill]] }
 0x412   : > { %p27_p3 = scmp.ge.s32.totalorder %s1425_s16, 4  }
 0x413   : > { %s1429_s14 = smov %s1426_s20 }
 0x414   :  { %29 = sbr.rel (!%p27_p3) target bundleno = 12 (0xc), region = 130 }
 0x419   :  { %653 = vsyncpa [#allocation3], 1 }
 0x41a   :  { %655 = vsyncpa [#allocation3 + $0x1], 1 }
 0x41b   :  { %656 = vsyncpa [#allocation6], 1 }
 0x41c   :  { %658 = vsyncpa [#allocation6 + $0x1], 1 }
 0x41d   :  { %659 = vsyncpa [#allocation9], 1 }
 0x41e   :  { %660 = vsyncpa [#allocation4], 1 }
 0x41f   :  { %662 = vsyncpa [#allocation4 + $0x1], 1 }

</bundles_post_ra>
